<compile_context>
chip_gen: v7x
topology: tpu7x:2x2x1
jax: 0.10.0
libtpu: 0.0.40
codegen_flags: <defaults>
</compile_context>

<pallas_src>
import jax
import jax.numpy as jnp
import numpy as np
from jax import lax
from jax.experimental import pallas as pl
from jax.experimental.pallas import tpu as pltpu

EPS = 1e-12
POWER_ITERATIONS = 1


def _sn_conv_kernel(w_ref, u_ref, v_ref, p_ref, b_ref,
                    o_ref, u_out_ref, v_out_ref):
    """Fused: power iteration -> sigma -> (W / sigma) @ patches + bias."""
    w = w_ref[...]          # (O, K)   flattened weight  W.view(height, -1)
    u = u_ref[...]          # (O, 1)
    v = v_ref[...]          # (1, K)

    # Power iteration.  At this size (8 x 36 = ~1 vreg) the two matvecs are a few
    # cycles of VALU/XLU work, so they stay as broadcast+reduce for lowering
    # robustness at degenerate (1xN / Nx1) matmul shapes.
    # TODO(synk): on real layer shapes (e.g. 512 x 4608) replace with MXU matvecs
    # (dot(u^T, W) / dot(W, v^T)) so they ride the otherwise-idle MXU.
    for _ in range(POWER_ITERATIONS):                 # trace-time unroll (1 iter)
        # v = l2normalize(W^T u)
        wu = jnp.sum(w * u, axis=0, keepdims=True)                  # (1, K)
        v = wu * lax.rsqrt(jnp.sum(wu * wu) + EPS * EPS)
        # u = l2normalize(W v)
        wv = jnp.sum(w * v, axis=1, keepdims=True)                  # (O, 1)
        u = wv * lax.rsqrt(jnp.sum(wv * wv) + EPS * EPS)

    # sigma = u . (W v); `wv` from the last iteration already equals W v for the
    # final v (v is not modified afterwards), matching the PyTorch update order.
    sigma = jnp.sum(u * wv)
    inv_sigma = 1.0 / sigma        # no eps guard, matching PyTorch's `w / sigma`

    u_out_ref[...] = u
    v_out_ref[...] = v

    # Conv as one lane-dense MXU matmul with the spectral scale fused into the tiny
    # (O, K) weight tile; output (O, M) has M = N*H*W (multiple of 128) on the lanes.
    # f32 operands kept (bf16 would be a win only at scaled-up sizes).
    o_ref[...] = (
        jnp.dot(w * inv_sigma, p_ref[...], preferred_element_type=jnp.float32)
        + b_ref[...]
    )


def spectral_norm_conv_forward(x, w_bar, bias, u, v):
    """x: (N, C, H, W); w_bar: (O, C, KH, KW); bias: (O,); u: (O,); v: (C*KH*KW,).

    Returns (y, u_new, v_new) with y: (N, O, H, W) — Conv2d(k=3, s=1, p=1) forward
    with the spectrally-normalized weight, exactly like SpectralNorm.forward.
    """
    N, C, Hh, Ww = x.shape
    O, _, KH, KW = w_bar.shape
    K = C * KH * KW
    M = N * Hh * Ww

    w_flat = w_bar.reshape(O, K).astype(jnp.float32)
    u_col = u.reshape(O, 1).astype(jnp.float32)
    v_row = v.reshape(1, K).astype(jnp.float32)
    b_col = bias.reshape(O, 1).astype(jnp.float32)

    # im2col directly into the transposed (K, M) layout with the K axis ordered
    # (C, KH, KW) — identical to PyTorch's weight.view(O, -1) flattening — so the
    # kernel hot path is a single (O, K) x (K, M) matmul and the patch/output tiles
    # are lane-dense.  Full-extent blocks also mean no M % 128 restriction.
    # TODO(synk): for realistic activation sizes, move im2col into the kernel (DMA
    # the padded input once into VMEM and form the 9 shifted views there) to avoid
    # the 9x HBM blow-up; at (2,4,16,16) the patch matrix is ~72 KB and negligible.
    xp = jnp.pad(x.astype(jnp.float32), ((0, 0), (0, 0), (1, 1), (1, 1)))  # pad=1
    cols = [xp[:, :, dh:dh + Hh, dw:dw + Ww]
            for dh in range(KH) for dw in range(KW)]           # each (N, C, H, W)
    shifted = jnp.stack(cols, axis=2)                           # (N, C, KH*KW, H, W)
    patches_t = (shifted.reshape(N, K, Hh, Ww)
                 .transpose(1, 0, 2, 3)
                 .reshape(K, M))                                # (K, N*H*W)

    # Single fused kernel, single grid step: patches 72 KB + output 16 KB +
    # weight/u/v/bias < 2 KB fit comfortably in VMEM on v5e/v6e/v7x.
    # (On v7x one could split M into 2 "parallel" steps to use both TensorCores.)
    out, u_new, v_new = pl.pallas_call(
        _sn_conv_kernel,
        grid=(1,),
        in_specs=[
            pl.BlockSpec((O, K), lambda i: (0, 0)),    # W_flat
            pl.BlockSpec((O, 1), lambda i: (0, 0)),    # u
            pl.BlockSpec((1, K), lambda i: (0, 0)),    # v
            pl.BlockSpec((K, M), lambda i: (0, 0)),    # patches^T (lane-dense)
            pl.BlockSpec((O, 1), lambda i: (0, 0)),    # bias
        ],
        out_specs=[
            pl.BlockSpec((O, M), lambda i: (0, 0)),    # conv output (lane-dense)
            pl.BlockSpec((O, 1), lambda i: (0, 0)),    # u_new
            pl.BlockSpec((1, K), lambda i: (0, 0)),    # v_new
        ],
        out_shape=[
            jax.ShapeDtypeStruct((O, M), jnp.float32),
            jax.ShapeDtypeStruct((O, 1), jnp.float32),
            jax.ShapeDtypeStruct((1, K), jnp.float32),
        ],
        compiler_params=pltpu.CompilerParams(
            dimension_semantics=("arbitrary",)),
    )(w_flat, u_col, v_row, patches_t, b_col)

    y = out.reshape(O, N, Hh, Ww).transpose(1, 0, 2, 3)         # back to NCHW
    return y, u_new.reshape(O), v_new.reshape(K)


if __name__ == "__main__":
    key = jax.random.PRNGKey(0)
    k_w, k_u, k_v, k_b, k_x = jax.random.split(key, 5)

    N, C, Hs, Ws = 2, 4, 16, 16
    O, KH, KW = 8, 3, 3
    Wf = C * KH * KW

    # deterministic parameter init (mirrors _make_params: u, v ~ N(0,1), l2-normalized)
    w_bar = jax.random.normal(k_w, (O, C, KH, KW), jnp.float32) * 0.1
    bias = jax.random.normal(k_b, (O,), jnp.float32) * 0.1
    u0 = jax.random.normal(k_u, (O,), jnp.float32)
    v0 = jax.random.normal(k_v, (Wf,), jnp.float32)
    u0 = u0 / (jnp.linalg.norm(u0) + EPS)
    v0 = v0 / (jnp.linalg.norm(v0) + EPS)

    x = jax.random.normal(k_x, (N, C, Hs, Ws), jnp.float32)

    y, u1, v1 = spectral_norm_conv_forward(x, w_bar, bias, u0, v0)
    jax.block_until_ready((y, u1, v1))

    # pure-JAX reference for correctness
    w_flat = w_bar.reshape(O, -1)
    v_r = w_flat.T @ u0
    v_r = v_r / (jnp.linalg.norm(v_r) + EPS)
    u_r = w_flat @ v_r
    u_r = u_r / (jnp.linalg.norm(u_r) + EPS)
    sigma = u_r @ (w_flat @ v_r)
    w_sn_ref = w_bar / sigma
    y_ref = lax.conv_general_dilated(
        x, w_sn_ref, (1, 1), "SAME",
        dimension_numbers=("NCHW", "OIHW", "NCHW"),
    ) + bias[None, :, None, None]

    assert y.shape == (N, O, Hs, Ws)
    np.testing.assert_allclose(np.asarray(y), np.asarray(y_ref), rtol=1e-3, atol=1e-3)
    np.testing.assert_allclose(np.asarray(u1), np.asarray(u_r), rtol=1e-4, atol=1e-5)
    np.testing.assert_allclose(np.asarray(v1), np.asarray(v_r), rtol=1e-4, atol=1e-5)

    print("KERNEL_OK")
</pallas_src>

<mosaic_0001>
module attributes {stable_mosaic.version = 11 : i64} {
  func.func @_sn_conv_kernel(%arg0: i32, %arg1: memref<8x36xf32, #tpu.memory_space<vmem>>, %arg2: memref<8x1xf32, #tpu.memory_space<vmem>>, %arg3: memref<1x36xf32, #tpu.memory_space<vmem>>, %arg4: memref<36x512xf32, #tpu.memory_space<vmem>>, %arg5: memref<8x1xf32, #tpu.memory_space<vmem>>, %arg6: memref<8x512xf32, #tpu.memory_space<vmem>>, %arg7: memref<8x1xf32, #tpu.memory_space<vmem>>, %arg8: memref<1x36xf32, #tpu.memory_space<vmem>>) attributes {dimension_semantics = [#tpu.dimension_semantics<arbitrary>], iteration_bounds = array<i64: 1>, scalar_prefetch = 0 : i64, scratch_operands = 0 : i64, tpu.core_type = #tpu.core_type<tc>, window_params = [{pipeline_mode = #tpu.pipeline_mode<synchronous>, transform_indices = @transform_0, window_bounds = array<i64: 8, 36>}, {pipeline_mode = #tpu.pipeline_mode<synchronous>, transform_indices = @transform_1, window_bounds = array<i64: 8, 1>}, {pipeline_mode = #tpu.pipeline_mode<synchronous>, transform_indices = @transform_2, window_bounds = array<i64: 1, 36>}, {pipeline_mode = #tpu.pipeline_mode<synchronous>, transform_indices = @transform_3, window_bounds = array<i64: 36, 512>}, {pipeline_mode = #tpu.pipeline_mode<synchronous>, transform_indices = @transform_4, window_bounds = array<i64: 8, 1>}, {pipeline_mode = #tpu.pipeline_mode<synchronous>, transform_indices = @transform_5, window_bounds = array<i64: 8, 512>}, {pipeline_mode = #tpu.pipeline_mode<synchronous>, transform_indices = @transform_6, window_bounds = array<i64: 8, 1>}, {pipeline_mode = #tpu.pipeline_mode<synchronous>, transform_indices = @transform_7, window_bounds = array<i64: 1, 36>}]} {
    %c0 = arith.constant 0 : index
    %c0_0 = arith.constant 0 : index
    %0 = vector.load %arg1[%c0, %c0_0] : memref<8x36xf32, #tpu.memory_space<vmem>>, vector<8x36xf32>
    %c0_1 = arith.constant 0 : index
    %c0_2 = arith.constant 0 : index
    %1 = vector.load %arg2[%c0_1, %c0_2] : memref<8x1xf32, #tpu.memory_space<vmem>>, vector<8x1xf32>
    %2 = vector.broadcast %1 : vector<8x1xf32> to vector<8x36xf32>
    %3 = arith.mulf %0, %2 : vector<8x36xf32>
    %cst = arith.constant dense<0.000000e+00> : vector<36xf32>
    %4 = vector.multi_reduction <add>, %3, %cst [0] : vector<8x36xf32> to vector<36xf32>
    %5 = vector.shape_cast %4 : vector<36xf32> to vector<1x36xf32>
    %6 = arith.mulf %5, %5 : vector<1x36xf32>
    %7 = vector.shape_cast %6 : vector<1x36xf32> to vector<1x1x36xf32>
    %cst_3 = arith.constant dense<0.000000e+00> : vector<1xf32>
    %8 = vector.multi_reduction <add>, %7, %cst_3 [1, 2] : vector<1x1x36xf32> to vector<1xf32>
    %9 = vector.shape_cast %8 : vector<1xf32> to vector<1x1x1xf32>
    %10 = vector.extract %9[0, 0, 0] : f32 from vector<1x1x1xf32>
    %cst_4 = arith.constant 1.000000e-24 : f32
    %11 = arith.addf %10, %cst_4 : f32
    %12 = math.rsqrt %11 : f32
    %13 = vector.broadcast %12 : f32 to vector<1x36xf32>
    %14 = arith.mulf %5, %13 : vector<1x36xf32>
    %15 = vector.broadcast %14 : vector<1x36xf32> to vector<8x36xf32>
    %16 = arith.mulf %0, %15 : vector<8x36xf32>
    %cst_5 = arith.constant dense<0.000000e+00> : vector<8xf32>
    %17 = vector.multi_reduction <add>, %16, %cst_5 [1] : vector<8x36xf32> to vector<8xf32>
    %18 = vector.shape_cast %17 : vector<8xf32> to vector<8x1xf32>
    %19 = arith.mulf %18, %18 : vector<8x1xf32>
    %20 = vector.shape_cast %19 : vector<8x1xf32> to vector<1x8x1xf32>
    %cst_6 = arith.constant dense<0.000000e+00> : vector<1xf32>
    %21 = vector.multi_reduction <add>, %20, %cst_6 [1, 2] : vector<1x8x1xf32> to vector<1xf32>
    %22 = vector.shape_cast %21 : vector<1xf32> to vector<1x1x1xf32>
    %23 = vector.extract %22[0, 0, 0] : f32 from vector<1x1x1xf32>
    %cst_7 = arith.constant 1.000000e-24 : f32
    %24 = arith.addf %23, %cst_7 : f32
    %25 = math.rsqrt %24 : f32
    %26 = vector.broadcast %25 : f32 to vector<8x1xf32>
    %27 = arith.mulf %18, %26 : vector<8x1xf32>
    %28 = arith.mulf %27, %18 : vector<8x1xf32>
    %29 = vector.shape_cast %28 : vector<8x1xf32> to vector<1x8x1xf32>
    %cst_8 = arith.constant dense<0.000000e+00> : vector<1xf32>
    %30 = vector.multi_reduction <add>, %29, %cst_8 [1, 2] : vector<1x8x1xf32> to vector<1xf32>
    %31 = vector.shape_cast %30 : vector<1xf32> to vector<1x1x1xf32>
    %32 = vector.extract %31[0, 0, 0] : f32 from vector<1x1x1xf32>
    %cst_9 = arith.constant 1.000000e+00 : f32
    %33 = arith.divf %cst_9, %32 : f32
    %c0_10 = arith.constant 0 : index
    %c0_11 = arith.constant 0 : index
    %34 = vector.load %arg7[%c0_10, %c0_11] : memref<8x1xf32, #tpu.memory_space<vmem>>, vector<8x1xf32>
    tpu.vector_store %arg7[%c0_10, %c0_11], %27 {strides = array<i32>} : memref<8x1xf32, #tpu.memory_space<vmem>>, vector<8x1xf32>,
    %c0_12 = arith.constant 0 : index
    %c0_13 = arith.constant 0 : index
    %35 = vector.load %arg8[%c0_12, %c0_13] : memref<1x36xf32, #tpu.memory_space<vmem>>, vector<1x36xf32>
    tpu.vector_store %arg8[%c0_12, %c0_13], %14 {strides = array<i32>} : memref<1x36xf32, #tpu.memory_space<vmem>>, vector<1x36xf32>,
    %36 = vector.broadcast %33 : f32 to vector<8x36xf32>
    %37 = arith.mulf %0, %36 : vector<8x36xf32>
    %c0_14 = arith.constant 0 : index
    %c0_15 = arith.constant 0 : index
    %38 = vector.load %arg4[%c0_14, %c0_15] : memref<36x512xf32, #tpu.memory_space<vmem>>, vector<36x512xf32>
    %cst_16 = arith.constant dense<0.000000e+00> : vector<8x512xf32>
    %39 = tpu.matmul %37, %38, %cst_16 {dimension_numbers = #tpu.dot_dimension_numbers<[1], [0], [0], [1], [0, 0, 1, 1], [], []>} : vector<8x36xf32>, vector<36x512xf32>, vector<8x512xf32> -> vector<8x512xf32>
    %c0_17 = arith.constant 0 : index
    %c0_18 = arith.constant 0 : index
    %40 = vector.load %arg5[%c0_17, %c0_18] : memref<8x1xf32, #tpu.memory_space<vmem>>, vector<8x1xf32>
    %41 = vector.broadcast %40 : vector<8x1xf32> to vector<8x512xf32>
    %42 = arith.addf %39, %41 : vector<8x512xf32>
    %c0_19 = arith.constant 0 : index
    %c0_20 = arith.constant 0 : index
    %43 = vector.load %arg6[%c0_19, %c0_20] : memref<8x512xf32, #tpu.memory_space<vmem>>, vector<8x512xf32>
    tpu.vector_store %arg6[%c0_19, %c0_20], %42 {strides = array<i32>} : memref<8x512xf32, #tpu.memory_space<vmem>>, vector<8x512xf32>,
    return
  }
  func.func @transform_0(%arg0: i32) -> (i32, i32) {
    %c0_i32 = arith.constant 0 : i32
    %c0_i32_0 = arith.constant 0 : i32
    %c0_i32_1 = arith.constant 0 : i32
    return %c0_i32, %c0_i32_0 : i32, i32
  }
  func.func @transform_1(%arg0: i32) -> (i32, i32) {
    %c0_i32 = arith.constant 0 : i32
    %c0_i32_0 = arith.constant 0 : i32
    %c0_i32_1 = arith.constant 0 : i32
    return %c0_i32, %c0_i32_0 : i32, i32
  }
  func.func @transform_2(%arg0: i32) -> (i32, i32) {
    %c0_i32 = arith.constant 0 : i32
    %c0_i32_0 = arith.constant 0 : i32
    %c0_i32_1 = arith.constant 0 : i32
    return %c0_i32, %c0_i32_0 : i32, i32
  }
  func.func @transform_3(%arg0: i32) -> (i32, i32) {
    %c0_i32 = arith.constant 0 : i32
    %c0_i32_0 = arith.constant 0 : i32
    %c0_i32_1 = arith.constant 0 : i32
    return %c0_i32, %c0_i32_0 : i32, i32
  }
  func.func @transform_4(%arg0: i32) -> (i32, i32) {
    %c0_i32 = arith.constant 0 : i32
    %c0_i32_0 = arith.constant 0 : i32
    %c0_i32_1 = arith.constant 0 : i32
    return %c0_i32, %c0_i32_0 : i32, i32
  }
  func.func @transform_5(%arg0: i32) -> (i32, i32) {
    %c0_i32 = arith.constant 0 : i32
    %c0_i32_0 = arith.constant 0 : i32
    %c0_i32_1 = arith.constant 0 : i32
    return %c0_i32, %c0_i32_0 : i32, i32
  }
  func.func @transform_6(%arg0: i32) -> (i32, i32) {
    %c0_i32 = arith.constant 0 : i32
    %c0_i32_0 = arith.constant 0 : i32
    %c0_i32_1 = arith.constant 0 : i32
    return %c0_i32, %c0_i32_0 : i32, i32
  }
  func.func @transform_7(%arg0: i32) -> (i32, i32) {
    %c0_i32 = arith.constant 0 : i32
    %c0_i32_0 = arith.constant 0 : i32
    %c0_i32_1 = arith.constant 0 : i32
    return %c0_i32, %c0_i32_0 : i32, i32
  }
}

</mosaic_0001>

<bundles_post_ra>
// kernel: tpu_custom_call.1
= control target key start
LH: loop header
LB: loop body
LE: loop exit
PB: predicated region body
PF: predicated region fallthrough
CT: control target
= control target key end

     0   :  { %13 = vsyncpa [#allocation3], 0  ;;  %s564_s0 = inlined_call_operand.vmem [shape: f32[8,36], index: 0, kind: input, shape index: {}]   ;;  %s565_s1 = inlined_call_operand.vmem [shape: f32[8,1], index: 1, kind: input, shape index: {}]   ;;  %s566_s2 = inlined_call_operand.vmem [shape: f32[1,36], index: 2, kind: input, shape index: {}]   ;;  %s567_s3 = inlined_call_operand.hbm [shape: f32[36,512], index: 3, kind: input, shape index: {}]   ;;  %s568_s4 = inlined_call_operand.vmem [shape: f32[8,1], index: 4, kind: input, shape index: {}]   ;;  %s569_s5 = inlined_call_operand.hbm [shape: f32[8,512], index: 5, kind: output, shape index: {0}]   ;;  %s570_s6 = inlined_call_operand.vmem [shape: f32[8,1], index: 6, kind: output, shape index: {1}]   ;;  %s571_s7 = inlined_call_operand.hbm [shape: f32[1,36], index: 7, kind: output, shape index: {2}]  }
   0x1   :  { %14 = vsyncpa [#allocation4], 0 }
   0x2   :  { %15 = vsyncpa [#allocation7], 0  ;;  %s455_s24 = smov [#allocation2]   ;;  %s383_s27 = scalar_lea.hbm %s567_s3, 2560 }
   0x3   :  { %s27_s2 = sshll.u32 %s455_s24, 4  ;;  %p384_p0 = scmp.ne.s32.totalorder %s567_s3, %s383_s27  ;;  %s28_s2 = int_to_ptr.vmem [resolvable:$true] %s27_s2 }
   0x4   :  { %p387_p1 = scmp.lt.u32.totalorder %s383_s27, %s567_s3 }
   0x6   :  { %p389_p2 = pnand %p387_p1, %p384_p0 }
   0x8   :  { %392 = shalt.err (!%p389_p2)
}
   0x9   :  { %s393_s9 = scalar_lea.vmem %s28_s2, 2560  ;;  %p398_p4 = scmp.lt.s32.totalorder %s28_s2, %s28_s2 }
   0xa   :  { %p394_p3 = scmp.ne.s32.totalorder %s28_s2, %s393_s9  ;;  %p399_p5 = scmp.lt.s32.totalorder %s393_s9, %s393_s9 }
   0xc   :  { %p400_p6 = por %p399_p5, %p398_p4 }
   0xe   :  { %p401_p7 = pnand %p400_p6, %p394_p3 }
  0x10   :  { %404 = shalt.err (!%p401_p7)
}
  0x11   :  { %s456_s10 = smov 512   ;;  %s457_s11 = smov 32  }
  0x12   :  { %33 = dma.hbm_to_vmem [thread:$0]  %s567_s3, 2560, %s28_s2, [#allocation3], %s456_s10, %s456_s10, %s457_s11  }
  0x13   :  { %449 = dma.done.wait [#allocation3], 2560  }
  0x14   :  { %450 = vsyncadd [#allocation3], 4294964736  ;;  %v458_v0 = vmov 0   ;;  %v40_v1 = vld [vmem:[%s565_s1] sm:$0xff]  ;;  %vm47_vm0 = vcmask 293888   ;;  %vm56_vm1 = vcmask 286720  }
  0x15   :  { %375 = vset.pattern.permute.xlu0 %v458_v0  ;;  %376 = vset.pattern.permute.xlu1 %v458_v0  ;;  %v520_v2 = vld [vmem:[%s564_s0] sm:$0xff]  ;;  %vm78_vm2 = vcmask 7168   ;;  %v114_v43 = vld [vmem:[#allocation2 + $0x8] sm:$0xff]  ;;  %v116_v45 = vld [vmem:[#allocation2 + $0x18] sm:$0xff]  ;;  %vm142_vm3 = vcmask 1043456  }
  0x16   :  { %43 = vperm.xlu0 %375, %v40_v1   ;;  %v118_v44 = vld [vmem:[#allocation2 + $0x28] sm:$0xff]  ;;  %v120_v47 = vld [vmem:[#allocation2 + $0x38] sm:$0xff]  ;;  %v113_v48 = vld [vmem:[#allocation2] sm:$0xff] }
  0x17   :  { %v340_v46 = vpack.c.bf16 %v118_v44, %v114_v43  ;;  %v117_v49 = vld [vmem:[#allocation2 + $0x20] sm:$0xff]  ;;  %v348_v50 = vpack.c.bf16 %v120_v47, %v116_v45  ;;  %v115_v52 = vld [vmem:[#allocation2 + $0x10] sm:$0xff]  ;;  %v122_v54 = vld [vmem:[#allocation2 + $0x48] sm:$0xff] }
  0x18   :  { %v342_v51 = vpack.c.bf16 %v117_v49, %v113_v48  ;;  %v119_v53 = vld [vmem:[#allocation2 + $0x30] sm:$0xff]  ;;  %v126_v56 = vld [vmem:[#allocation2 + $0x68] sm:$0xff]  ;;  %v124_v57 = vld [vmem:[#allocation2 + $0x58] sm:$0xff] }
  0x19   :  { %341 = vmatprep.subr.bf16.mxu0 %v340_v46  ;;  %v350_v55 = vpack.c.bf16 %v119_v53, %v115_v52  ;;  %v128_v58 = vld [vmem:[#allocation2 + $0x78] sm:$0xff]  ;;  %349 = vmatprep.subr.bf16.mxu1 %v348_v50  ;;  %v344_v59 = vpack.c.bf16 %v126_v56, %v122_v54  ;;  %v121_v61 = vld [vmem:[#allocation2 + $0x40] sm:$0xff]  ;;  %v123_v63 = vld [vmem:[#allocation2 + $0x50] sm:$0xff] }
  0x1a   :  { %343 = vmatpush1.bf16.msra.mxu0 %v342_v51  ;;  %v352_v60 = vpack.c.bf16 %v128_v58, %v124_v57  ;;  %v125_v62 = vld [vmem:[#allocation2 + $0x60] sm:$0xff]  ;;  %v127_v1 = vld [vmem:[#allocation2 + $0x70] sm:$0xff] }
  0x1b   :  { %351 = vmatpush1.bf16.msra.mxu1 %v350_v55  ;;  %v346_v0 = vpack.c.bf16 %v125_v62, %v121_v61  ;;  %345 = vmatprep.subr.bf16.mxu0 %v344_v59 }
  0x1c   :  { %353 = vmatprep.subr.bf16.mxu1 %v352_v60 }
  0x1e   :  { %347 = vmatpush1.bf16.msra.mxu0 %v346_v0 }
  0x95   :  { %v44_v3 = vpop.permute.xlu0 %43 }
  0x96   :  { %v46_v4 = vmul.f32 %v44_v3, %v520_v2  ;;  %v354_v3 = vpack.c.bf16 %v127_v1, %v123_v63 }
  0x98   :  { %v48_v5 = vsel %vm47_vm0, %v46_v4, 0.0  ;;  %355 = vmatpush1.bf16.msra.mxu1 %v354_v3  ;;  %v130_v4 = vld [vmem:[#allocation2 + $0x88] sm:$0xf] }
  0x99   :  { %v49_v6 = vrot.slane %v48_v5, 4  ;;  %334 = vmatprep.subr.msk.mxu0 %vm142_vm3, %v130_v4 }
  0x9b   :  { %v50_v7 = vadd.f32 %v49_v6, %v48_v5  ;;  %v132_v5 = vld [vmem:[#allocation2 + $0x98] sm:$0xf]  ;;  %v129_v6 = vld [vmem:[#allocation2 + $0x80] sm:$0xf] }
  0x9c   :  { %337 = vmatprep.subr.msk.mxu1 %vm142_vm3, %v132_v5  ;;  %335 = vmatpush1.msk.msra.mxu0 %vm142_vm3, %v129_v6 }
  0x9d   :  { %v51_v8 = vrot.slane %v50_v7, 2 }
  0x9f   :  { %v52_v9 = vadd.f32 %v51_v8, %v50_v7  ;;  %v131_v7 = vld [vmem:[#allocation2 + $0x90] sm:$0xf]  ;;  %v459_v8 = vmov 0.0  }
  0xa0   :  { %219 = vmatprep.mubr.f32.mxu0 %v459_v8  ;;  %338 = vmatpush1.msk.msra.mxu1 %vm142_vm3, %v131_v7 }
  0xa1   :  { %v53_v10 = vrot.slane %v52_v9, 1  ;;  %290 = vmatprep.mubr.f32.mxu1 %v459_v8 }
  0xa3   :  { %v54_v11 = vadd.f32 %v53_v10, %v52_v9  ;;  %v133_v10 = vld [vmem:[%s568_s4] sm:$0xff]  ;;  %s460_s4 = smov [#allocation6]  }
  0xa4   :  { %s319_s25 = sshll.u32 %s460_s4, 4  ;;  %s320_s25 = int_to_ptr.vmem [resolvable:$true] %s319_s25 }
  0xa5   :  { %v55_v12 = vmul.f32 %v54_v11, %v54_v11  ;;  %s405_s26 = scalar_lea.vmem %s320_s25, 16  ;;  %s409_s27 = scalar_lea.vmem %s320_s25, 32 }
  0xa6   :  { %p406_p8 = scmp.ne.s32.totalorder %s320_s25, %s405_s26  ;;  %p410_p9 = scmp.lt.s32.totalorder %s320_s25, %s320_s25 }
  0xa7   :  { %v57_v13 = vsel %vm56_vm1, %v55_v12, 0.0  ;;  %p411_p10 = scmp.lt.s32.totalorder %s409_s27, %s405_s26 }
  0xa8   :  { %58 = vadd.xlane.f32.xlu0 %v57_v13 }
  0xa9   :  { %p412_p11 = por %p411_p10, %p410_p9 }
  0xab   :  { %p413_p12 = pnand %p412_p11, %p406_p8 }
 0x135   :  { %v59_v14 = vpop.xlane.xlu0 %58 }
 0x136   :  { %v60_v15 = vrot.slane %v59_v14, 4 }
 0x138   :  { %v61_v16 = vadd.f32 %v60_v15, %v59_v14 }
 0x13a   :  { %v62_v17 = vrot.slane %v61_v16, 2 }
 0x13c   :  { %v63_v18 = vadd.f32 %v62_v17, %v61_v16 }
 0x13e   :  { %v64_v19 = vrot.slane %v63_v18, 1 }
 0x140   :  { %v65_v20 = vadd.f32 %v64_v19, %v63_v18 }
 0x142   :  { %356 = vpush %v65_v20 }
 0x173   :  { %s357_s0 = spop %356 }
 0x174   :  { %s67_s1 = sadd.f32 1e-24, %s357_s0 }
 0x176   :  { %v68_v21 = vstv %s67_s1 }
 0x177   :  { %377 = vrsqrt.f32 %v68_v21 }
 0x181   :  { %v378_v22 = vpop.eup %377 }
 0x182   :  { %358 = vpush %v378_v22 }
 0x1b3   :  { %s359_s3 = spop %358 }
 0x1b4   :  { %v71_v23 = vstv %s359_s3 }
 0x1b5   :  { %v72_v24 = vmul.f32 %v71_v23, %v54_v11 }
 0x1b7   :  { %110 = vst.msk [vmem:[#allocation6] sm:$0x1] %vm56_vm1, %v72_v24  ;;  %v73_v25 = vmul.f32 %v72_v24, %v520_v2 }
 0x1b9   :  { %v74_v26 = vsel %vm47_vm0, %v73_v25, 0.0 }
 0x1ba   :  { %75 = vadd.xlane.f32.xlu1 %v74_v26 }
 0x247   :  { %v76_v27 = vpop.xlane.xlu1 %75 }
 0x248   :  { %v77_v28 = vmul.f32 %v76_v27, %v76_v27 }
 0x24a   :  { %v79_v29 = vsel %vm78_vm2, %v77_v28, 0.0 }
 0x24b   :  { %80 = vadd.xlane.f32.xlu1 %v79_v29 }
 0x2d8   :  { %v81_v30 = vpop.xlane.xlu1 %80 }
 0x2d9   :  { %v82_v31 = vrot.slane %v81_v30, 4 }
 0x2db   :  { %v83_v32 = vadd.f32 %v82_v31, %v81_v30 }
 0x2dd   :  { %v84_v33 = vrot.slane %v83_v32, 2 }
 0x2df   :  { %v85_v34 = vadd.f32 %v84_v33, %v83_v32 }
 0x2e1   :  { %v86_v35 = vrot.slane %v85_v34, 1 }
 0x2e3   :  { %v87_v36 = vadd.f32 %v86_v35, %v85_v34 }
 0x2e5   :  { %360 = vpush %v87_v36 }
 0x316   :  { %s361_s18 = spop %360 }
 0x317   :  { %s89_s19 = sadd.f32 1e-24, %s361_s18 }
 0x319   :  { %v90_v37 = vstv %s89_s19 }
 0x31a   :  { %379 = vrsqrt.f32 %v90_v37 }
 0x324   :  { %v380_v38 = vpop.eup %379 }
 0x325   :  { %362 = vpush %v380_v38 }
 0x356   :  { %s363_s20 = spop %362 }
 0x357   :  { %v93_v39 = vstv %s363_s20 }
 0x358   :  { %v94_v40 = vmul.f32 %v93_v39, %v76_v27 }
 0x35a   :  { %109 = vst.msk [vmem:[%s570_s6] sm:$0xff] %vm78_vm2, %v94_v40  ;;  %v95_v41 = vmul.f32 %v94_v40, %v76_v27 }
 0x35c   :  { %v96_v42 = vsel %vm78_vm2, %v95_v41, 0.0 }
 0x35d   :  { %97 = vadd.xlane.f32.xlu1 %v96_v42 }
 0x36e   :  { %136 = vperm.xlu1 %376, %v133_v10  }
 0x3ea   :  { %v98_v9 = vpop.xlane.xlu1 %97 }
 0x3eb   :  { %v99_v11 = vrot.slane %v98_v9, 4 }
 0x3ed   :  { %v100_v12 = vadd.f32 %v99_v11, %v98_v9 }
 0x3ef   :  { %v101_v13 = vrot.slane %v100_v12, 2 }
 0x3f1   :  { %v102_v14 = vadd.f32 %v101_v13, %v100_v12 }
 0x3f3   :  { %v103_v15 = vrot.slane %v102_v14, 1 }
 0x3f5   :  { %v104_v16 = vadd.f32 %v103_v15, %v102_v14 }
 0x3f7   :  { %364 = vpush %v104_v16 }
 0x428   :  { %s365_s24 = spop %364 }
 0x429   :  { %v106_v17 = vstv %s365_s24 }
 0x42a   :  { %381 = vrcp.f32 %v106_v17 }
 0x434   :  { %v382_v18 = vpop.eup %381 }
 0x435   :  { %366 = vpush %v382_v18 }
 0x466   :  { %s367_s2 = spop %366 }
 0x467   :  { %v111_v19 = vstv %s367_s2 }
 0x468   :  { %v112_v20 = vmul.f32 %v111_v19, %v520_v2 }
 0x46a   :  { %336 = vmatmul.mubr.msk.f32.vlgmr.msra.gmra.mrb[0].mxu0 %vm47_vm0, %v112_v20  ;;  %339 = vmatmul.mubr.msk.f32.vlgmr.msra.gmra.mrb[0].mxu1 %vm47_vm0, %v112_v20 }
 0x46b   :  { %416 = shalt.err (!%p413_p12)
}
 0x46c   :  { %s417_s30 = scalar_lea.hbm %s571_s7, 16 }
 0x46d   :  { %p418_p13 = scmp.ne.s32.totalorder %s571_s7, %s417_s30  ;;  %p421_p0 = scmp.lt.u32.totalorder %s417_s30, %s571_s7 }
 0x46f   :  { %p423_p1 = pnand %p421_p0, %p418_p13 }
 0x471   :  { %426 = shalt.err (!%p423_p1)
}
 0x472   :  { %322 = dma.vmem_to_hbm [thread:$0]  %s320_s25, 16, %s571_s7, [#allocation7]   ;;  %v137_v2 = vpop.permute.xlu1 %136 }
 0x473   :  { %s461_s14 = smov [#allocation5]  }
 0x474   :  { %s307_s15 = sshll.u32 %s461_s14, 4  ;;  %s308_s15 = int_to_ptr.vmem [resolvable:$true] %s307_s15 }
 0x475   :  { %s427_s16 = scalar_lea.vmem %s308_s15, 512  ;;  %p432_p3 = scmp.lt.s32.totalorder %s308_s15, %s308_s15 }
 0x476   :  { %p428_p2 = scmp.ne.s32.totalorder %s308_s15, %s427_s16  ;;  %p433_p4 = scmp.lt.s32.totalorder %s427_s16, %s427_s16 }
 0x478   :  { %p434_p5 = por %p433_p4, %p432_p3 }
 0x47a   :  { %p435_p6 = pnand %p434_p5, %p428_p2 }
 0x53d   :  { %v221_v21 = vpop.f32.mrb[0].mxu0  ;;  %v292_v22 = vpop.f32.mrb[0].mxu1 }
 0x53e   :  { %v222_v23 = vadd.f32 %v221_v21, %v137_v2  ;;  %v293_v24 = vadd.f32 %v292_v22, %v137_v2  ;;  %v223_v25 = vpop.f32.mrb[1].mxu0  ;;  %v294_v26 = vpop.f32.mrb[1].mxu1 }
 0x53f   :  { %v224_v27 = vadd.f32 %v223_v25, %v137_v2  ;;  %v295_v28 = vadd.f32 %v294_v26, %v137_v2 }
 0x540   :  { %297 = vst [vmem:[#allocation5] sm:$0xff] %v222_v23  ;;  %299 = vst [vmem:[#allocation5 + $0x10] sm:$0xff] %v293_v24 }
 0x541   :  { %298 = vst [vmem:[#allocation5 + $0x8] sm:$0xff] %v224_v27  ;;  %300 = vst [vmem:[#allocation5 + $0x18] sm:$0xff] %v295_v28 }
 0x542   :  { %438 = shalt.err (!%p435_p6)
}
 0x543   :  { %s439_s0 = scalar_lea.hbm %s569_s5, 512 }
 0x544   :  { %p440_p7 = scmp.ne.s32.totalorder %s569_s5, %s439_s0  ;;  %p443_p8 = scmp.lt.u32.totalorder %s439_s0, %s569_s5 }
 0x546   :  { %p445_p9 = pnand %p443_p8, %p440_p7 }
 0x548   :  { %448 = shalt.err (!%p445_p9)
}
 0x549   :  { %310 = dma.vmem_to_hbm [thread:$0]  %s308_s15, 512, %s569_s5, [#allocation4]  }
 0x54a   :  { %451 = dma.done.wait [#allocation4], 512  }
 0x54b   :  { %452 = vsyncadd [#allocation4], 4294966784 }
 0x54c   :  { %453 = dma.done.wait [#allocation7], 16  }
 0x54d   :  { %454 = vsyncadd [#allocation7], 4294967280 }
 0x54e   :  { %331 = vsyncpa [#allocation3], 1 }
 0x54f   :  { %332 = vsyncpa [#allocation4], 1 }
 0x550   :  { %333 = vsyncpa [#allocation7], 1 }

</bundles_post_ra>
